<compile_context>
chip_gen: v7x
topology: tpu7x:2x2x1
jax: 0.10.0
libtpu: 0.0.40
codegen_flags: <defaults>
</compile_context>

<pallas_src>
import functools

import jax
import jax.numpy as jnp
from jax.experimental import pallas as pl
from jax.experimental.pallas import tpu as pltpu

MARGIN = 1.0
EPS = 1e-6  # F.pairwise_distance default eps

_TILE_VMEM_BUDGET = 24 * 1024 * 1024   # double-buffered z1+z2+label streaming buffers
_CHUNK_TARGET_BYTES = 1 * 1024 * 1024  # (chunk, D) f32 in-kernel intermediates
_MAX_CHUNK_ROWS = 256                  # bounds lane-sparse (chunk, 1) column vregs
_VMEM_LIMIT_BYTES = 48 * 1024 * 1024   # safe on v5e/v6e (128 MiB) and v7x (64 MiB)


def _round_up(x, m):
    return ((x + m - 1) // m) * m


def _choose_tiling(batch, feat, itemsize):
    """Returns (tile_b, chunk): rows per grid step and rows per inner loop step."""
    # Sublane packing: f32 -> 8 rows/vreg, bf16 -> 16, int8/fp8 -> 32.
    row_align = {4: 8, 2: 16, 1: 32}.get(itemsize, 8)

    # Inner chunk: bounds both the (chunk, D) f32 intermediates and the
    # lane-sparse (chunk, 1) epilogue columns, independent of tile_b.
    chunk = _CHUNK_TARGET_BYTES // max(1, feat * 4)
    chunk = max(row_align, min(_MAX_CHUNK_ROWS, (chunk // row_align) * row_align))
    chunk = min(chunk, _round_up(batch, row_align))

    # Streamed tile: sized by VMEM bytes, not rows.  Per row (double-buffered):
    #   2 inputs x 2 buffers x feat x itemsize  +  2 buffers x 128 lanes x 4B label.
    bytes_per_row = 4 * feat * itemsize + 2 * 128 * 4
    tile_b = _TILE_VMEM_BUDGET // max(1, bytes_per_row)
    tile_b = max(chunk, (tile_b // chunk) * chunk)
    tile_b = min(tile_b, _round_up(batch, chunk))

    # Prefer >= 2 grid tiles so the "parallel" batch axis can be sharded across
    # both TensorCores on v7x (harmless extra grid step on single-TC v5e/v6e).
    if tile_b == _round_up(batch, chunk) and tile_b >= 2 * chunk:
        tile_b = _round_up((tile_b + 1) // 2, chunk)

    return tile_b, chunk


def _euclidean_loss_kernel(z1_ref, z2_ref, label_ref, out_ref, acc_ref, *,
                           batch, tile_b, chunk, margin, eps):
    i = pl.program_id(0)
    tile_row0 = i * tile_b
    n_chunks = tile_b // chunk

    acc_ref[...] = jnp.zeros_like(acc_ref)

    @pl.loop(0, n_chunks)
    def _(c):
        r = pl.multiple_of(c * chunk, chunk)
        # Stream native dtype (e.g. bf16) from VMEM; compute in f32 on the VPU.
        z1 = z1_ref[pl.ds(r, chunk), :].astype(jnp.float32)   # (chunk, D)
        z2 = z2_ref[pl.ds(r, chunk), :].astype(jnp.float32)   # (chunk, D)
        diff = z1 - z2 + eps                                   # elementwise +eps (torch semantics)
        sq = jnp.sum(diff * diff, axis=-1, keepdims=True)      # (chunk, 1) == dist^2

        lab = label_ref[pl.ds(r, chunk), :]                    # (chunk, 1) f32
        hinge = jnp.maximum(margin - jnp.sqrt(sq), 0.0)
        loss = lab * sq + (1.0 - lab) * (hinge * hinge)        # (chunk, 1)

        # Mask padded rows with a SELECT (garbage/NaN padding must not propagate).
        row_ids = jax.lax.broadcasted_iota(jnp.int32, (chunk, 1), 0) + (tile_row0 + r)
        loss = jnp.where(row_ids < batch, loss, 0.0)

        acc_ref[...] += loss

    partial = jnp.sum(acc_ref[...])
    # Lane-dense, unmasked store: fill the whole (8, 128) output block with this
    # tile's partial sum; the wrapper picks one lane per tile.
    out_ref[...] = jnp.full(out_ref.shape, partial, dtype=jnp.float32)


def euclidean_loss(z1, z2, label, margin=MARGIN, eps=EPS):
    """z1, z2: (B, D) float (f32 or bf16); label: (B,) 0/1. Returns scalar f32."""
    B, D = z1.shape
    itemsize = jnp.dtype(z1.dtype).itemsize
    tile_b, chunk = _choose_tiling(B, D, itemsize)
    num_tiles = pl.cdiv(B, tile_b)

    label2d = label.reshape(B, 1).astype(jnp.float32)

    kernel = functools.partial(
        _euclidean_loss_kernel,
        batch=B, tile_b=tile_b, chunk=chunk, margin=margin, eps=eps)

    # TODO(synk): for very wide embeddings (D >~ 200K f32) add a second
    # ("arbitrary") grid axis over D with a (chunk, 1) f32 VMEM accumulator so
    # per-tile VMEM stays bounded on v7x's 64 MiB.
    partials = pl.pallas_call(
        kernel,
        out_shape=jax.ShapeDtypeStruct((8, 128 * num_tiles), jnp.float32),
        grid_spec=pltpu.PrefetchScalarGridSpec(
            num_scalar_prefetch=0,
            grid=(num_tiles,),
            in_specs=[
                pl.BlockSpec((tile_b, D), lambda i: (i, 0)),
                pl.BlockSpec((tile_b, D), lambda i: (i, 0)),
                pl.BlockSpec((tile_b, 1), lambda i: (i, 0)),
            ],
            out_specs=pl.BlockSpec((8, 128), lambda i: (0, i)),
            scratch_shapes=[pltpu.VMEM((chunk, 1), jnp.float32)],
        ),
        compiler_params=pltpu.CompilerParams(
            dimension_semantics=("parallel",),
            vmem_limit_bytes=_VMEM_LIMIT_BYTES,
        ),
    )(z1, z2, label2d)

    # Every element of a tile's (8, 128) block holds that tile's partial sum.
    per_tile = partials[0].reshape(num_tiles, 128)[:, 0]
    return jnp.sum(per_tile) / B


def euclidean_loss_ref(z1, z2, label, margin=MARGIN, eps=EPS):
    # Pure-JAX reference, faithful to the PyTorch module (incl. elementwise +eps).
    z1 = z1.astype(jnp.float32)
    z2 = z2.astype(jnp.float32)
    diff = z1 - z2 + eps
    dist = jnp.sqrt(jnp.sum(diff * diff, axis=-1))
    loss = label * dist**2 + (1.0 - label) * jnp.maximum(margin - dist, 0.0) ** 2
    return jnp.mean(loss)


if __name__ == "__main__":
    key = jax.random.PRNGKey(0)

    # Test 1: small f32 case (single tile, single chunk).
    k1, k2, k3, key = jax.random.split(key, 4)
    B, D = 8, 32
    z1 = jax.random.normal(k1, (B, D), dtype=jnp.float32)
    z2 = jax.random.normal(k2, (B, D), dtype=jnp.float32)
    label = (jax.random.uniform(k3, (B,)) > 0.5).astype(jnp.float32)

    out = jax.block_until_ready(euclidean_loss(z1, z2, label))
    ref = euclidean_loss_ref(z1, z2, label)
    assert jnp.allclose(out, ref, rtol=1e-5, atol=1e-5), (out, ref)

    # Test 2: bf16 inputs, multiple tiles + remainder masking (B not a multiple
    # of the tile), non-128-multiple D, bf16 row alignment.
    k1, k2, k3, key = jax.random.split(key, 4)
    B2, D2 = 300, 160
    z1b = jax.random.normal(k1, (B2, D2), dtype=jnp.float32).astype(jnp.bfloat16)
    z2b = jax.random.normal(k2, (B2, D2), dtype=jnp.float32).astype(jnp.bfloat16)
    labelb = (jax.random.uniform(k3, (B2,)) > 0.5).astype(jnp.float32)

    out2 = jax.block_until_ready(euclidean_loss(z1b, z2b, labelb))
    ref2 = euclidean_loss_ref(z1b, z2b, labelb)
    assert jnp.allclose(out2, ref2, rtol=1e-5, atol=1e-5), (out2, ref2)

    print("KERNEL_OK")
</pallas_src>

<mosaic_0001>
module attributes {stable_mosaic.version = 11 : i64} {
  func.func @_euclidean_loss_kernel(%arg0: i32, %arg1: memref<8x32xf32, #tpu.memory_space<vmem>>, %arg2: memref<8x32xf32, #tpu.memory_space<vmem>>, %arg3: memref<8x1xf32, #tpu.memory_space<vmem>>, %arg4: memref<8x128xf32, #tpu.memory_space<vmem>>, %arg5: memref<8x1xf32, #tpu.memory_space<vmem>>) attributes {dimension_semantics = [#tpu.dimension_semantics<parallel>], iteration_bounds = array<i64: 1>, scalar_prefetch = 0 : i64, scratch_operands = 1 : i64, tpu.core_type = #tpu.core_type<tc>, window_params = [{transform_indices = @transform_0, window_bounds = array<i64: 8, 32>}, {transform_indices = @transform_1, window_bounds = array<i64: 8, 32>}, {transform_indices = @transform_2, window_bounds = array<i64: 8, 1>}, {transform_indices = @transform_3, window_bounds = array<i64: 8, 128>}]} {
    %c8_i32 = arith.constant 8 : i32
    %0 = arith.muli %arg0, %c8_i32 : i32
    %cst = arith.constant 0.000000e+00 : f32
    %1 = vector.broadcast %cst : f32 to vector<8x1xf32>
    %c0 = arith.constant 0 : index
    %c0_0 = arith.constant 0 : index
    %2 = vector.load %arg5[%c0, %c0_0] : memref<8x1xf32, #tpu.memory_space<vmem>>, vector<8x1xf32>
    tpu.vector_store %arg5[%c0, %c0_0], %1 {strides = array<i32>} : memref<8x1xf32, #tpu.memory_space<vmem>>, vector<8x1xf32>,
    %c0_i32 = arith.constant 0 : i32
    %c1_i32 = arith.constant 1 : i32
    %3 = arith.muli %c0_i32, %c1_i32 : i32
    %c0_i32_1 = arith.constant 0 : i32
    %4 = arith.addi %c0_i32_1, %3 : i32
    %c8_i32_2 = arith.constant 8 : i32
    %5 = arith.muli %4, %c8_i32_2 : i32
    %6 = tpu.assume_multiple %5, 8 : i32
    %7 = arith.index_cast %6 : i32 to index
    %c0_3 = arith.constant 0 : index
    %8 = vector.load %arg1[%7, %c0_3] : memref<8x32xf32, #tpu.memory_space<vmem>>, vector<8x32xf32>
    %9 = arith.index_cast %6 : i32 to index
    %c0_4 = arith.constant 0 : index
    %10 = vector.load %arg2[%9, %c0_4] : memref<8x32xf32, #tpu.memory_space<vmem>>, vector<8x32xf32>
    %11 = arith.subf %8, %10 : vector<8x32xf32>
    %cst_5 = arith.constant 9.99999997E-7 : f32
    %12 = vector.broadcast %cst_5 : f32 to vector<8x32xf32>
    %13 = arith.addf %11, %12 : vector<8x32xf32>
    %14 = arith.mulf %13, %13 : vector<8x32xf32>
    %cst_6 = arith.constant dense<0.000000e+00> : vector<8xf32>
    %15 = vector.multi_reduction <add>, %14, %cst_6 [1] : vector<8x32xf32> to vector<8xf32>
    %16 = vector.shape_cast %15 : vector<8xf32> to vector<8x1xf32>
    %17 = arith.index_cast %6 : i32 to index
    %c0_7 = arith.constant 0 : index
    %18 = vector.load %arg3[%17, %c0_7] : memref<8x1xf32, #tpu.memory_space<vmem>>, vector<8x1xf32>
    %19 = math.sqrt %16 : vector<8x1xf32>
    %cst_8 = arith.constant 1.000000e+00 : f32
    %20 = vector.broadcast %cst_8 : f32 to vector<8x1xf32>
    %21 = arith.subf %20, %19 : vector<8x1xf32>
    %cst_9 = arith.constant 0.000000e+00 : f32
    %22 = vector.broadcast %cst_9 : f32 to vector<8x1xf32>
    %23 = arith.maximumf %21, %22 : vector<8x1xf32>
    %24 = arith.mulf %18, %16 : vector<8x1xf32>
    %cst_10 = arith.constant 1.000000e+00 : f32
    %25 = vector.broadcast %cst_10 : f32 to vector<8x1xf32>
    %26 = arith.subf %25, %18 : vector<8x1xf32>
    %27 = arith.mulf %23, %23 : vector<8x1xf32>
    %28 = arith.mulf %26, %27 : vector<8x1xf32>
    %29 = arith.addf %24, %28 : vector<8x1xf32>
    %30 = tpu.iota {dimensions = array<i32: 0>} : vector<8x1xi32>
    %31 = arith.addi %0, %6 : i32
    %32 = vector.broadcast %31 : i32 to vector<8x1xi32>
    %33 = arith.addi %30, %32 : vector<8x1xi32>
    %c8_i32_11 = arith.constant 8 : i32
    %34 = vector.broadcast %c8_i32_11 : i32 to vector<8x1xi32>
    %35 = arith.cmpi slt, %33, %34 : vector<8x1xi32>
    %cst_12 = arith.constant 0.000000e+00 : f32
    %36 = vector.broadcast %cst_12 : f32 to vector<8x1xf32>
    %37 = arith.select %35, %29, %36 : vector<8x1xi1>, vector<8x1xf32>
    %c0_13 = arith.constant 0 : index
    %c0_14 = arith.constant 0 : index
    %38 = vector.load %arg5[%c0_13, %c0_14] : memref<8x1xf32, #tpu.memory_space<vmem>>, vector<8x1xf32>
    %39 = arith.addf %38, %37 : vector<8x1xf32>
    %c0_15 = arith.constant 0 : index
    %c0_16 = arith.constant 0 : index
    %40 = vector.load %arg5[%c0_15, %c0_16] : memref<8x1xf32, #tpu.memory_space<vmem>>, vector<8x1xf32>
    tpu.vector_store %arg5[%c0_15, %c0_16], %39 {strides = array<i32>} : memref<8x1xf32, #tpu.memory_space<vmem>>, vector<8x1xf32>,
    %c1_i32_17 = arith.constant 1 : i32
    %c0_18 = arith.constant 0 : index
    %c0_19 = arith.constant 0 : index
    %41 = vector.load %arg5[%c0_18, %c0_19] : memref<8x1xf32, #tpu.memory_space<vmem>>, vector<8x1xf32>
    %42 = vector.shape_cast %41 : vector<8x1xf32> to vector<1x8x1xf32>
    %cst_20 = arith.constant dense<0.000000e+00> : vector<1xf32>
    %43 = vector.multi_reduction <add>, %42, %cst_20 [1, 2] : vector<1x8x1xf32> to vector<1xf32>
    %44 = vector.shape_cast %43 : vector<1xf32> to vector<1x1x1xf32>
    %45 = vector.extract %44[0, 0, 0] : f32 from vector<1x1x1xf32>
    %46 = vector.broadcast %45 : f32 to vector<8x128xf32>
    %c0_21 = arith.constant 0 : index
    %c0_22 = arith.constant 0 : index
    %47 = vector.load %arg4[%c0_21, %c0_22] : memref<8x128xf32, #tpu.memory_space<vmem>>, vector<8x128xf32>
    tpu.vector_store %arg4[%c0_21, %c0_22], %46 {strides = array<i32>} : memref<8x128xf32, #tpu.memory_space<vmem>>, vector<8x128xf32>,
    return
  }
  func.func @transform_0(%arg0: i32) -> (i32, i32) {
    %c0_i32 = arith.constant 0 : i32
    %c0_i32_0 = arith.constant 0 : i32
    return %arg0, %c0_i32 : i32, i32
  }
  func.func @transform_1(%arg0: i32) -> (i32, i32) {
    %c0_i32 = arith.constant 0 : i32
    %c0_i32_0 = arith.constant 0 : i32
    return %arg0, %c0_i32 : i32, i32
  }
  func.func @transform_2(%arg0: i32) -> (i32, i32) {
    %c0_i32 = arith.constant 0 : i32
    %c0_i32_0 = arith.constant 0 : i32
    return %arg0, %c0_i32 : i32, i32
  }
  func.func @transform_3(%arg0: i32) -> (i32, i32) {
    %c0_i32 = arith.constant 0 : i32
    %c0_i32_0 = arith.constant 0 : i32
    return %c0_i32, %arg0 : i32, i32
  }
}

</mosaic_0001>

<bundles_post_ra>
// kernel: tpu_custom_call.1
= control target key start
LH: loop header
LB: loop body
LE: loop exit
PB: predicated region body
PF: predicated region fallthrough
CT: control target
= control target key end

     0   :  { %8 = vsyncpa [#allocation4], 0  ;;  %s203_s0 = inlined_call_operand.vmem [shape: f32[8,32], index: 0, kind: input, shape index: {}]   ;;  %s204_s1 = inlined_call_operand.hbm [shape: f32[8,32], index: 1, kind: input, shape index: {}]   ;;  %s205_s2 = inlined_call_operand.vmem [shape: f32[8,1], index: 2, kind: input, shape index: {}]   ;;  %s206_s3 = inlined_call_operand.hbm [shape: f32[8,128], index: 3, kind: output, shape index: {}]  }
   0x1   :  { %9 = vsyncpa [#allocation5], 0  ;;  %s147_s12 = smov [#allocation3]   ;;  %s99_s16 = scalar_lea.hbm %s204_s1, 128 }
   0x2   :  { %s18_s13 = sshll.u32 %s147_s12, 4  ;;  %p100_p0 = scmp.ne.s32.totalorder %s204_s1, %s99_s16  ;;  %s19_s13 = int_to_ptr.vmem [resolvable:$true] %s18_s13 }
   0x3   :  { %p103_p1 = scmp.lt.u32.totalorder %s99_s16, %s204_s1 }
   0x5   :  { %p105_p2 = pnand %p103_p1, %p100_p0 }
   0x7   :  { %108 = shalt.err (!%p105_p2)
}
   0x8   :  { %s109_s21 = scalar_lea.vmem %s19_s13, 128  ;;  %p114_p4 = scmp.lt.s32.totalorder %s19_s13, %s19_s13 }
   0x9   :  { %p110_p3 = scmp.ne.s32.totalorder %s19_s13, %s109_s21  ;;  %p115_p5 = scmp.lt.s32.totalorder %s109_s21, %s109_s21 }
   0xb   :  { %p116_p6 = por %p115_p5, %p114_p4 }
   0xd   :  { %p117_p7 = pnand %p116_p6, %p110_p3 }
   0xf   :  { %120 = shalt.err (!%p117_p7)
}
  0x10   :  { %21 = dma.hbm_to_vmem [thread:$0]  %s204_s1, 128, %s19_s13, [#allocation4]  }
  0x11   :  { %143 = dma.done.wait [#allocation4], 128  }
  0x12   :  { %144 = vsyncadd [#allocation4], 4294967168  ;;  %v30_v0 = vld [vmem:[%s203_s0] sm:$0xff]  ;;  %v31_v1 = vld [vmem:[#allocation3] sm:$0xff]  ;;  %vm35_vm0 = vcmask 261120   ;;  %vm28_vm1 = vcmask 7168  }
  0x13   :  { %v32_v2 = vsub.f32 %v30_v0, %v31_v1  ;;  %v148_v6 = vmov 0.0   ;;  %v39_v14 = vld [vmem:[%s205_s2] sm:$0xff]  ;;  %s149_s2 = smov [#allocation6]  }
  0x14   :  { %29 = vst.msk [vmem:[#allocation2] sm:$0xff] %vm28_vm1, %v148_v6  ;;  %v50_v15 = vsub.f32 1.0, %v39_v14  ;;  %s83_s26 = sshll.u32 %s149_s2, 4  ;;  %s84_s26 = int_to_ptr.vmem [resolvable:$true] %s83_s26 }
  0x15   :  { %v33_v3 = vadd.f32 1e-06, %v32_v2  ;;  %s121_s28 = scalar_lea.vmem %s84_s26, 128  ;;  %p126_p9 = scmp.lt.s32.totalorder %s84_s26, %s84_s26 }
  0x16   :  { %p122_p8 = scmp.ne.s32.totalorder %s84_s26, %s121_s28  ;;  %p127_p10 = scmp.lt.s32.totalorder %s121_s28, %s121_s28 }
  0x17   :  { %v34_v4 = vmul.f32 %v33_v3, %v33_v3 }
  0x18   :  { %p128_p11 = por %p127_p10, %p126_p9 }
  0x19   :  { %v36_v5 = vsel %vm35_vm0, %v34_v4, 0.0 }
  0x1a   :  { %37 = vadd.xlane.f32.xlu0 %v36_v5  ;;  %p129_p12 = pnand %p128_p11, %p122_p8 }
  0x1b   :  { %v61_v20 = vld [vmem:[#allocation2] sm:$0xff] }
  0xa7   :  { %v38_v7 = vpop.xlane.xlu0 %37 }
  0xa8   :  { %97 = vrsqrt.f32 %v38_v7  ;;  %vm42_vm2 = vcmp.eq.f32.partialorder %v38_v7, inf  ;;  %v45_v10 = vand.u32 2147483648, %v38_v7  ;;  %vm44_vm3 = vcmp.eq.f32.partialorder %v38_v7, 0.0 }
  0xa9   :  { %v49_v18 = vmul.f32 %v39_v14, %v38_v7 }
  0xb2   :  { %v98_v8 = vpop.eup %97 }
  0xb3   :  { %v41_v9 = vmul.f32 %v98_v8, %v38_v7 }
  0xb5   :  { %v43_v11 = vsel %vm42_vm2, %v38_v7, %v41_v9 }
  0xb6   :  { %v46_v12 = vsel %vm44_vm3, %v45_v10, %v43_v11 }
  0xb7   :  { %v47_v13 = vsub.f32 1.0, %v46_v12 }
  0xb9   :  { %v48_v16 = vmax.f32 %v47_v13, 0.0 }
  0xbb   :  { %v51_v17 = vmul.f32 %v48_v16, %v48_v16 }
  0xbd   :  { %v52_v19 = vmul.f32 %v51_v17, %v50_v15 }
  0xbf   :  { %v53_v21 = vadd.f32 %v52_v19, %v49_v18 }
  0xc1   :  { %v62_v22 = vadd.f32 %v61_v20, %v53_v21 }
  0xc3   :  { %63 = vst.msk [vmem:[#allocation2] sm:$0xff] %vm28_vm1, %v62_v22 }
  0xca   :  { %v64_v23 = vld [vmem:[#allocation2] sm:$0xff] }
  0xcb   :  { %v65_v24 = vsel %vm28_vm1, %v64_v23, 0.0 }
  0xcc   :  { %66 = vadd.xlane.f32.xlu0 %v65_v24 }
 0x159   :  { %v67_v25 = vpop.xlane.xlu0 %66 }
 0x15a   :  { %v68_v26 = vrot.slane %v67_v25, 4 }
 0x15c   :  { %v69_v27 = vadd.f32 %v68_v26, %v67_v25 }
 0x15e   :  { %v70_v28 = vrot.slane %v69_v27, 2 }
 0x160   :  { %v71_v29 = vadd.f32 %v70_v28, %v69_v27 }
 0x162   :  { %v72_v30 = vrot.slane %v71_v29, 1 }
 0x164   :  { %v73_v31 = vadd.f32 %v72_v30, %v71_v29 }
 0x166   :  { %92 = vpush %v73_v31 }
 0x197   :  { %s93_s27 = spop %92 }
 0x198   :  { %v75_v32 = vstv %s93_s27 }
 0x199   :  { %76 = vst [vmem:[#allocation6] sm:$0xff] %v75_v32 }
 0x19a   :  { %132 = shalt.err (!%p129_p12)
}
 0x19b   :  { %s133_s4 = scalar_lea.hbm %s206_s3, 128 }
 0x19c   :  { %p134_p13 = scmp.ne.s32.totalorder %s206_s3, %s133_s4  ;;  %p137_p0 = scmp.lt.u32.totalorder %s133_s4, %s206_s3 }
 0x19e   :  { %p139_p1 = pnand %p137_p0, %p134_p13 }
 0x1a0   :  { %142 = shalt.err (!%p139_p1)
}
 0x1a1   :  { %86 = dma.vmem_to_hbm [thread:$0]  %s84_s26, 128, %s206_s3, [#allocation5]  }
 0x1a2   :  { %145 = dma.done.wait [#allocation5], 128  }
 0x1a3   :  { %146 = vsyncadd [#allocation5], 4294967168 }
 0x1a4   :  { %90 = vsyncpa [#allocation4], 1 }
 0x1a5   :  { %91 = vsyncpa [#allocation5], 1 }

</bundles_post_ra>
